<compile_context>
chip_gen: v7x
topology: tpu7x:2x2x1
jax: 0.10.0
libtpu: 0.0.40
codegen_flags: <defaults>
</compile_context>

<pallas_src>
import functools

import jax
import jax.numpy as jnp
from jax.experimental import pallas as pl
from jax.experimental.pallas import tpu as pltpu

IN_DIM = 178
HID = 16
OUT_DIM = 5
MAX_BATCH_TILE = 8192      # rows per grid step; f32 x double-buffer ~11.7 MiB
SUBLANE = 8                # f32 sublane multiple


def mlp_kernel(x_ref, w1_ref, b1_ref, w2_ref, b2_ref, w3_ref, b3_ref, o_ref):
    # Everything in f32: operands, MXU accumulation, bias-add, ReLU.
    x = x_ref[...]
    h1 = jnp.dot(x, w1_ref[...], preferred_element_type=jnp.float32) + b1_ref[...]
    h1 = jnp.maximum(h1, 0.0)
    h2 = jnp.dot(h1, w2_ref[...], preferred_element_type=jnp.float32) + b2_ref[...]
    h2 = jnp.maximum(h2, 0.0)
    out = jnp.dot(h2, w3_ref[...], preferred_element_type=jnp.float32) + b3_ref[...]
    o_ref[...] = out.astype(o_ref.dtype)


def _choose_tiling(B, batch_tile):
    """Pick (padded_batch, batch_tile) at trace time."""
    b_pad = max(SUBLANE, -(-B // SUBLANE) * SUBLANE)     # round up to sublanes
    n_tiles = -(-b_pad // batch_tile)                    # enough tiles to fit
    if b_pad >= 2 * SUBLANE:
        # >= 2 parallel grid steps so both v7x TensorCores get work.
        n_tiles = max(n_tiles, 2)
    tb = -(-b_pad // n_tiles)
    tb = -(-tb // SUBLANE) * SUBLANE                     # keep tile sublane-aligned
    tb = min(tb, batch_tile)
    b_pad = -(-b_pad // tb) * tb
    return b_pad, tb


@functools.partial(jax.jit, static_argnames=("batch_tile",))
def mymlp_forward(x, params, *, batch_tile=MAX_BATCH_TILE):
    w1, b1, w2, b2, w3, b3 = params
    B = x.shape[0]
    b_pad, tb = _choose_tiling(B, batch_tile)

    # Only copy x when the batch is ragged w.r.t. the tile; the common
    # round-batch case streams x directly from its original HBM buffer.
    if b_pad != B:
        x = jnp.pad(x, ((0, b_pad - B), (0, 0)))

    grid = (b_pad // tb,)

    def resident(a):
        # Same block index every grid step -> stays VMEM-resident.
        return pl.BlockSpec(a.shape, lambda i: (0,) * a.ndim)

    out = pl.pallas_call(
        mlp_kernel,
        out_shape=jax.ShapeDtypeStruct((b_pad, OUT_DIM), jnp.float32),
        grid=grid,
        in_specs=[
            pl.BlockSpec((tb, IN_DIM), lambda i: (i, 0)),   # x: streamed over batch
            resident(w1), resident(b1),
            resident(w2), resident(b2),
            resident(w3), resident(b3),
        ],
        out_specs=pl.BlockSpec((tb, OUT_DIM), lambda i: (i, 0)),
        compiler_params=pltpu.CompilerParams(
            dimension_semantics=("parallel",),
            vmem_limit_bytes=48 * 1024 * 1024,   # sized for v7x's 64 MiB/TC VMEM
        ),
    )(x, w1, b1, w2, b2, w3, b3)

    return out[:B]


def init_params(key):
    # Deterministic init mimicking nn.Linear default (uniform +/- 1/sqrt(fan_in)).
    ks = jax.random.split(key, 6)

    def lin(kw, kb, fan_in, fan_out):
        bound = 1.0 / jnp.sqrt(fan_in)
        # weight stored as (fan_in, fan_out) so the kernel does x @ W directly
        w = jax.random.uniform(kw, (fan_in, fan_out), jnp.float32, -bound, bound)
        b = jax.random.uniform(kb, (1, fan_out), jnp.float32, -bound, bound)
        return w, b

    w1, b1 = lin(ks[0], ks[1], IN_DIM, HID)
    w2, b2 = lin(ks[2], ks[3], HID, HID)
    w3, b3 = lin(ks[4], ks[5], HID, OUT_DIM)
    return (w1, b1, w2, b2, w3, b3)


def reference_forward(x, params):
    # Pure f32 reference, matching the PyTorch module's math.
    w1, b1, w2, b2, w3, b3 = params
    h1 = jnp.maximum(x @ w1 + b1, 0.0)
    h2 = jnp.maximum(h1 @ w2 + b2, 0.0)
    return h2 @ w3 + b3


if __name__ == "__main__":
    key = jax.random.PRNGKey(0)
    kx, kp = jax.random.split(key)
    params = init_params(kp)

    # Small batch (single grid step) and a ragged batch (padding + 2 parallel steps).
    for B in (8, 300):
        x = jax.random.normal(kx, (B, IN_DIM), jnp.float32)
        out = jax.block_until_ready(mymlp_forward(x, params))
        ref = reference_forward(x, params)
        assert out.shape == (B, OUT_DIM), out.shape
        err = float(jnp.max(jnp.abs(out - ref)))
        assert jnp.allclose(out, ref, atol=1e-2, rtol=1e-2), err

    print("KERNEL_OK")
</pallas_src>

<mosaic_0001>
module attributes {stable_mosaic.version = 11 : i64} {
  func.func @mlp_kernel(%arg0: i32, %arg1: memref<8x178xf32, #tpu.memory_space<vmem>>, %arg2: memref<178x16xf32, #tpu.memory_space<vmem>>, %arg3: memref<1x16xf32, #tpu.memory_space<vmem>>, %arg4: memref<16x16xf32, #tpu.memory_space<vmem>>, %arg5: memref<1x16xf32, #tpu.memory_space<vmem>>, %arg6: memref<16x5xf32, #tpu.memory_space<vmem>>, %arg7: memref<1x5xf32, #tpu.memory_space<vmem>>, %arg8: memref<8x5xf32, #tpu.memory_space<vmem>>) attributes {dimension_semantics = [#tpu.dimension_semantics<parallel>], iteration_bounds = array<i64: 1>, scalar_prefetch = 0 : i64, scratch_operands = 0 : i64, tpu.core_type = #tpu.core_type<tc>, window_params = [{transform_indices = @transform_0, window_bounds = array<i64: 8, 178>}, {pipeline_mode = #tpu.pipeline_mode<synchronous>, transform_indices = @transform_1, window_bounds = array<i64: 178, 16>}, {pipeline_mode = #tpu.pipeline_mode<synchronous>, transform_indices = @transform_2, window_bounds = array<i64: 1, 16>}, {pipeline_mode = #tpu.pipeline_mode<synchronous>, transform_indices = @transform_3, window_bounds = array<i64: 16, 16>}, {pipeline_mode = #tpu.pipeline_mode<synchronous>, transform_indices = @transform_4, window_bounds = array<i64: 1, 16>}, {pipeline_mode = #tpu.pipeline_mode<synchronous>, transform_indices = @transform_5, window_bounds = array<i64: 16, 5>}, {pipeline_mode = #tpu.pipeline_mode<synchronous>, transform_indices = @transform_6, window_bounds = array<i64: 1, 5>}, {transform_indices = @transform_7, window_bounds = array<i64: 8, 5>}]} {
    %c0 = arith.constant 0 : index
    %c0_0 = arith.constant 0 : index
    %0 = vector.load %arg1[%c0, %c0_0] : memref<8x178xf32, #tpu.memory_space<vmem>>, vector<8x178xf32>
    %c0_1 = arith.constant 0 : index
    %c0_2 = arith.constant 0 : index
    %1 = vector.load %arg2[%c0_1, %c0_2] : memref<178x16xf32, #tpu.memory_space<vmem>>, vector<178x16xf32>
    %cst = arith.constant dense<0.000000e+00> : vector<8x16xf32>
    %2 = tpu.matmul %0, %1, %cst {dimension_numbers = #tpu.dot_dimension_numbers<[1], [0], [0], [1], [0, 0, 1, 1], [], []>} : vector<8x178xf32>, vector<178x16xf32>, vector<8x16xf32> -> vector<8x16xf32>
    %c0_3 = arith.constant 0 : index
    %c0_4 = arith.constant 0 : index
    %3 = vector.load %arg3[%c0_3, %c0_4] : memref<1x16xf32, #tpu.memory_space<vmem>>, vector<1x16xf32>
    %4 = vector.broadcast %3 : vector<1x16xf32> to vector<8x16xf32>
    %5 = arith.addf %2, %4 : vector<8x16xf32>
    %cst_5 = arith.constant 0.000000e+00 : f32
    %6 = vector.broadcast %cst_5 : f32 to vector<8x16xf32>
    %7 = arith.maximumf %5, %6 : vector<8x16xf32>
    %c0_6 = arith.constant 0 : index
    %c0_7 = arith.constant 0 : index
    %8 = vector.load %arg4[%c0_6, %c0_7] : memref<16x16xf32, #tpu.memory_space<vmem>>, vector<16x16xf32>
    %cst_8 = arith.constant dense<0.000000e+00> : vector<8x16xf32>
    %9 = tpu.matmul %7, %8, %cst_8 {dimension_numbers = #tpu.dot_dimension_numbers<[1], [0], [0], [1], [0, 0, 1, 1], [], []>} : vector<8x16xf32>, vector<16x16xf32>, vector<8x16xf32> -> vector<8x16xf32>
    %c0_9 = arith.constant 0 : index
    %c0_10 = arith.constant 0 : index
    %10 = vector.load %arg5[%c0_9, %c0_10] : memref<1x16xf32, #tpu.memory_space<vmem>>, vector<1x16xf32>
    %11 = vector.broadcast %10 : vector<1x16xf32> to vector<8x16xf32>
    %12 = arith.addf %9, %11 : vector<8x16xf32>
    %cst_11 = arith.constant 0.000000e+00 : f32
    %13 = vector.broadcast %cst_11 : f32 to vector<8x16xf32>
    %14 = arith.maximumf %12, %13 : vector<8x16xf32>
    %c0_12 = arith.constant 0 : index
    %c0_13 = arith.constant 0 : index
    %15 = vector.load %arg6[%c0_12, %c0_13] : memref<16x5xf32, #tpu.memory_space<vmem>>, vector<16x5xf32>
    %cst_14 = arith.constant dense<0.000000e+00> : vector<8x5xf32>
    %16 = tpu.matmul %14, %15, %cst_14 {dimension_numbers = #tpu.dot_dimension_numbers<[1], [0], [0], [1], [0, 0, 1, 1], [], []>} : vector<8x16xf32>, vector<16x5xf32>, vector<8x5xf32> -> vector<8x5xf32>
    %c0_15 = arith.constant 0 : index
    %c0_16 = arith.constant 0 : index
    %17 = vector.load %arg7[%c0_15, %c0_16] : memref<1x5xf32, #tpu.memory_space<vmem>>, vector<1x5xf32>
    %18 = vector.broadcast %17 : vector<1x5xf32> to vector<8x5xf32>
    %19 = arith.addf %16, %18 : vector<8x5xf32>
    %c0_17 = arith.constant 0 : index
    %c0_18 = arith.constant 0 : index
    %20 = vector.load %arg8[%c0_17, %c0_18] : memref<8x5xf32, #tpu.memory_space<vmem>>, vector<8x5xf32>
    tpu.vector_store %arg8[%c0_17, %c0_18], %19 {strides = array<i32>} : memref<8x5xf32, #tpu.memory_space<vmem>>, vector<8x5xf32>,
    return
  }
  func.func @transform_0(%arg0: i32) -> (i32, i32) {
    %c0_i32 = arith.constant 0 : i32
    %c0_i32_0 = arith.constant 0 : i32
    return %arg0, %c0_i32 : i32, i32
  }
  func.func @transform_1(%arg0: i32) -> (i32, i32) {
    %c0_i32 = arith.constant 0 : i32
    %c0_i32_0 = arith.constant 0 : i32
    %c0_i32_1 = arith.constant 0 : i32
    return %c0_i32, %c0_i32_0 : i32, i32
  }
  func.func @transform_2(%arg0: i32) -> (i32, i32) {
    %c0_i32 = arith.constant 0 : i32
    %c0_i32_0 = arith.constant 0 : i32
    %c0_i32_1 = arith.constant 0 : i32
    return %c0_i32, %c0_i32_0 : i32, i32
  }
  func.func @transform_3(%arg0: i32) -> (i32, i32) {
    %c0_i32 = arith.constant 0 : i32
    %c0_i32_0 = arith.constant 0 : i32
    %c0_i32_1 = arith.constant 0 : i32
    return %c0_i32, %c0_i32_0 : i32, i32
  }
  func.func @transform_4(%arg0: i32) -> (i32, i32) {
    %c0_i32 = arith.constant 0 : i32
    %c0_i32_0 = arith.constant 0 : i32
    %c0_i32_1 = arith.constant 0 : i32
    return %c0_i32, %c0_i32_0 : i32, i32
  }
  func.func @transform_5(%arg0: i32) -> (i32, i32) {
    %c0_i32 = arith.constant 0 : i32
    %c0_i32_0 = arith.constant 0 : i32
    %c0_i32_1 = arith.constant 0 : i32
    return %c0_i32, %c0_i32_0 : i32, i32
  }
  func.func @transform_6(%arg0: i32) -> (i32, i32) {
    %c0_i32 = arith.constant 0 : i32
    %c0_i32_0 = arith.constant 0 : i32
    %c0_i32_1 = arith.constant 0 : i32
    return %c0_i32, %c0_i32_0 : i32, i32
  }
  func.func @transform_7(%arg0: i32) -> (i32, i32) {
    %c0_i32 = arith.constant 0 : i32
    %c0_i32_0 = arith.constant 0 : i32
    return %arg0, %c0_i32 : i32, i32
  }
}

</mosaic_0001>

<bundles_post_ra>
// kernel: mymlp_forward.1
= control target key start
LH: loop header
LB: loop body
LE: loop exit
PB: predicated region body
PF: predicated region fallthrough
CT: control target
= control target key end

     0   :  { %v414_v3 = vmov 0.0|0.0   ;;  %vm59_vm0 = vcmask 408576   ;;  %s579_s0 = inlined_call_operand.vmem [shape: f32[8,178], index: 0, kind: input, shape index: {}]   ;;  %s580_s1 = inlined_call_operand.vmem [shape: f32[178,16], index: 1, kind: input, shape index: {}]   ;;  %s581_s2 = inlined_call_operand.vmem [shape: f32[1,16], index: 2, kind: input, shape index: {}]   ;;  %s582_s3 = inlined_call_operand.vmem [shape: f32[16,16], index: 3, kind: input, shape index: {}]   ;;  %s583_s4 = inlined_call_operand.vmem [shape: f32[1,16], index: 4, kind: input, shape index: {}]   ;;  %s584_s5 = inlined_call_operand.vmem [shape: f32[16,5], index: 5, kind: input, shape index: {}]   ;;  %s585_s6 = inlined_call_operand.vmem [shape: f32[1,5], index: 6, kind: input, shape index: {}]   ;;  %s586_s7 = inlined_call_operand.hbm [shape: f32[8,5], index: 7, kind: output, shape index: {}]  }
   0x1   :  { %v29_v0 = vld [vmem:[%s580_s1] sm:$0xff]  ;;  %v30_v1 = vld [vmem:[%s580_s1 + $0x8] sm:$0xff]  ;;  %v31_v2 = vld [vmem:[%s580_s1 + $0x10] sm:$0xff]  ;;  %347 = vmatprep.subr.bf16.mxu0 %v414_v3  ;;  %380 = vmatprep.subr.bf16.mxu1 %v414_v3 }
   0x2   :  { %v348_v4 = vpack.c.bf16 %v30_v1, %v29_v0  ;;  %v32_v5 = vld [vmem:[%s580_s1 + $0x18] sm:$0xff]  ;;  %v33_v7 = vld [vmem:[%s580_s1 + $0x20] sm:$0xff]  ;;  %v34_v8 = vld [vmem:[%s580_s1 + $0x28] sm:$0xff] }
   0x3   :  { %v351_v6 = vpack.c.bf16 %v32_v5, %v31_v2  ;;  %v354_v9 = vpack.c.bf16 %v34_v8, %v33_v7  ;;  %v28_v10 = vld [vmem:[%s579_s0 + $0x8] sm:$0xff]  ;;  %v35_v11 = vld [vmem:[%s580_s1 + $0x30] sm:$0xff]  ;;  %v36_v12 = vld [vmem:[%s580_s1 + $0x38] sm:$0xff] }
   0x4   :  { %349 = vmatpush1.bf16.msra.mxu0 %v348_v4  ;;  %322 = vmatprep.mubr.msk.f32.mxu0 %vm59_vm0, %v28_v10 }
   0x5   :  { %350 = vmatprep.subr.bf16.mxu0 %v414_v3 }
   0x8   :  { %352 = vmatpush1.bf16.msra.mxu0 %v351_v6 }
   0x9   :  { %353 = vmatprep.subr.bf16.mxu0 %v414_v3 }
   0xa   :  { %12 = vsyncpa [#allocation3], 0  ;;  %v357_v13 = vpack.c.bf16 %v36_v12, %v35_v11  ;;  %v37_v14 = vld [vmem:[%s580_s1 + $0x40] sm:$0xff]  ;;  %v38_v15 = vld [vmem:[%s580_s1 + $0x48] sm:$0xff]  ;;  %v415_v35 = vmov 0.0   ;;  %vm63_vm1 = vcmask 1041408  }
   0xb   :  { %v360_v16 = vpack.c.bf16 %v38_v15, %v37_v14  ;;  %v39_v17 = vld [vmem:[%s580_s1 + $0x50] sm:$0xff]  ;;  %v40_v18 = vld [vmem:[%s580_s1 + $0x58] sm:$0xff]  ;;  %v41_v20 = vld [vmem:[%s580_s1 + $0x60] sm:$0xff]  ;;  %vm416_vm2 = vmmov 0   ;;  %vm147_vm3 = vcmask 130048   ;;  %s417_s15 = smov [#allocation2]  }
   0xc   :  { %355 = vmatpush1.bf16.msra.mxu0 %v354_v9  ;;  %v363_v19 = vpack.c.bf16 %v40_v18, %v39_v17  ;;  %v42_v21 = vld [vmem:[%s580_s1 + $0x68] sm:$0xff]  ;;  %v43_v23 = vld [vmem:[%s580_s1 + $0x70] sm:$0xff]  ;;  %v44_v24 = vld [vmem:[%s580_s1 + $0x78] sm:$0xff]  ;;  %337 = vmatprep.mubr.msk.f32.mxu1 %vm416_vm2, %v415_v35  ;;  %s312_s16 = sshll.u32 %s417_s15, 4  ;;  %vm304_vm4 = vcmask 39936   ;;  %s313_s16 = int_to_ptr.vmem [resolvable:$true] %s312_s16 }
   0xd   :  { %356 = vmatprep.subr.bf16.mxu0 %v414_v3  ;;  %v366_v22 = vpack.c.bf16 %v42_v21, %v41_v20  ;;  %v369_v25 = vpack.c.bf16 %v44_v24, %v43_v23  ;;  %v45_v26 = vld [vmem:[%s580_s1 + $0x80] sm:$0xff]  ;;  %v46_v27 = vld [vmem:[%s580_s1 + $0x88] sm:$0xff]  ;;  %v47_v29 = vld [vmem:[%s580_s1 + $0x90] sm:$0xff]  ;;  %p395_p1 = scmp.lt.s32.totalorder %s313_s16, %s313_s16 }
   0xe   :  { %v372_v28 = vpack.c.bf16 %v46_v27, %v45_v26  ;;  %v48_v30 = vld [vmem:[%s580_s1 + $0x98] sm:$0xff]  ;;  %v49_v32 = vld [vmem:[%s580_s1 + $0xa0] sm:$0xff]  ;;  %v50_v33 = vld [vmem:[%s580_s1 + $0xa8] sm:$0xff] }
   0xf   :  { %v375_v31 = vpack.c.bf16 %v48_v30, %v47_v29  ;;  %v378_v34 = vpack.c.bf16 %v50_v33, %v49_v32  ;;  %v51_v36 = vld [vmem:[%s580_s1 + $0xb0] sm:$0x3]  ;;  %v27_v37 = vld [vmem:[%s579_s0] sm:$0xff]  ;;  %v139_v39 = vld [vmem:[%s582_s3 + $0x8] sm:$0xff] }
  0x10   :  { %358 = vmatpush1.bf16.msra.mxu0 %v357_v13  ;;  %v138_v38 = vld [vmem:[%s582_s3] sm:$0xff]  ;;  %v223_v47 = vld [vmem:[%s584_s5 + $0x8] sm:$0xff] }
  0x11   :  { %359 = vmatprep.subr.bf16.mxu0 %v414_v3  ;;  %v381_v40 = vpack.c.bf16 %v139_v39, %v138_v38  ;;  %v320_v41 = vld [vmem:[%s581_s2] ss:$0 sm:$0xff] }
  0x12   :  { %v222_v46 = vld [vmem:[%s584_s5] sm:$0xff]  ;;  %s390_s5 = scalar_lea.vmem %s313_s16, 128 }
  0x13   :  { %382 = vmatpush3.bf16.msra.mxu1 %v381_v40  ;;  %v384_v48 = vpack.c.bf16 %v223_v47, %v222_v46  ;;  %v323_v49 = vld [vmem:[%s583_s4] ss:$0 sm:$0xff]  ;;  %p391_p0 = scmp.ne.s32.totalorder %s313_s16, %s390_s5  ;;  %p396_p2 = scmp.lt.s32.totalorder %s390_s5, %s390_s5 }
  0x14   :  { %361 = vmatpush1.bf16.msra.mxu0 %v360_v16  ;;  %383 = vmatprep.subr.bf16.mxu1 %v414_v3  ;;  %v325_v54 = vld [vmem:[%s585_s6] ss:$0 sm:$0xff] }
  0x15   :  { %362 = vmatprep.subr.bf16.mxu0 %v414_v3  ;;  %p397_p3 = por %p396_p2, %p395_p1 }
  0x17   :  { %p398_p4 = pnand %p397_p3, %p391_p0 }
  0x18   :  { %364 = vmatpush1.bf16.msra.mxu0 %v363_v19 }
  0x19   :  { %365 = vmatprep.subr.bf16.mxu0 %v414_v3 }
  0x1c   :  { %367 = vmatpush1.bf16.msra.mxu0 %v366_v22 }
  0x1d   :  { %368 = vmatprep.subr.bf16.mxu0 %v414_v3 }
  0x20   :  { %370 = vmatpush1.bf16.msra.mxu0 %v369_v25 }
  0x21   :  { %371 = vmatprep.subr.bf16.mxu0 %v414_v3 }
  0x24   :  { %373 = vmatpush1.bf16.msra.mxu0 %v372_v28 }
  0x25   :  { %374 = vmatprep.subr.bf16.mxu0 %v414_v3 }
  0x28   :  { %376 = vmatpush1.bf16.msra.mxu0 %v375_v31 }
  0x29   :  { %377 = vmatprep.subr.bf16.mxu0 %v414_v3 }
  0x2c   :  { %379 = vmatpush1.bf16.msra.mxu0 %v378_v34 }
  0x2d   :  { %111 = vmatprep.subr.mxu0 %v415_v35 }
  0x30   :  { %321 = vmatpush1.msk.msra.mxu0 %vm63_vm1, %v51_v36 }
  0x31   :  { %132 = vmatmul.mubr.f32.vlgmr.msra.gmra.mrb[0].mxu0 %v27_v37 }
 0x104   :  { %v133_v42 = vpop.f32.mrb[0].mxu0 }
 0x105   :  { %v134_v43 = vadd.f32 %v320_v41, %v133_v42  ;;  %v135_v44 = vpop.f32.mrb[1].mxu0 }
 0x107   :  { %v137_v45 = vmax.f32 %v134_v43, 0.0 }
 0x109   :  { %338 = vmatmul.mubr.msk.f32.vlgmr.msra.gmra.mrb[0].mxu1 %vm147_vm3, %v137_v45 }
 0x10a   :  { %344 = vmatprep.mubr.msk.f32.mxu1 %vm416_vm2, %v415_v35  ;;  %385 = vmatpush3.bf16.msra.mxu1 %v384_v48 }
 0x1dc   :  { %v217_v50 = vpop.f32.mrb[0].mxu1 }
 0x1dd   :  { %v218_v51 = vadd.f32 %v323_v49, %v217_v50  ;;  %v339_v52 = vpop.f32.mrb[1].mxu1 }
 0x1df   :  { %v221_v53 = vmax.f32 %v218_v51, 0.0 }
 0x1e1   :  { %345 = vmatmul.mubr.msk.f32.vlgmr.msra.gmra.mrb[2].mxu1 %vm147_vm3, %v221_v53 }
 0x2b4   :  { %v300_v55 = vpop.f32.mrb[2].mxu1 }
 0x2b5   :  { %v301_v56 = vadd.f32 %v325_v54, %v300_v55  ;;  %v346_v57 = vpop.f32.mrb[3].mxu1 }
 0x2b7   :  { %305 = vst.msk [vmem:[#allocation2] sm:$0xff] %vm304_vm4, %v301_v56 }
 0x2b8   :  { %401 = shalt.err (!%p398_p4)
}
 0x2b9   :  { %s402_s18 = scalar_lea.hbm %s586_s7, 128 }
 0x2ba   :  { %p403_p5 = scmp.ne.s32.totalorder %s586_s7, %s402_s18  ;;  %p406_p6 = scmp.lt.u32.totalorder %s402_s18, %s586_s7 }
 0x2bc   :  { %p408_p7 = pnand %p406_p6, %p403_p5 }
 0x2be   :  { %411 = shalt.err (!%p408_p7)
}
 0x2bf   :  { %315 = dma.vmem_to_hbm [thread:$0]  %s313_s16, 128, %s586_s7, [#allocation3]  }
 0x2c0   :  { %412 = dma.done.wait [#allocation3], 128  }
 0x2c1   :  { %413 = vsyncadd [#allocation3], 4294967168 }
 0x2c2   :  { %319 = vsyncpa [#allocation3], 1 }

</bundles_post_ra>
